<compile_context>
chip_gen: v7x
topology: tpu7x:2x2x1
jax: 0.10.0
libtpu: 0.0.40
codegen_flags: <defaults>
</compile_context>

<pallas_src>
import numpy as np
import jax
import jax.numpy as jnp
from jax.experimental import pallas as pl
from jax.experimental.pallas import tpu as pltpu


def _round_up(x: int, m: int) -> int:
    return ((x + m - 1) // m) * m


# ----------------------------------------------------------------------------
# Pallas kernel: pure lane-dense elementwise scale (VPU only, no transpose/XLU)
# ----------------------------------------------------------------------------
def _scale_kernel(basis_ref, sizes_ref, out_ref):
    # basis_ref: (tile_s, F) in_dtype; sizes_ref: (1, F) f32; out_ref: (tile_s, F)
    b = basis_ref[...].astype(jnp.float32)          # multiply in f32 (PyTorch parity)
    out_ref[...] = (b * sizes_ref[...]).astype(out_ref.dtype)


# ----------------------------------------------------------------------------
# Chip-aware parameters (perf-only; safe fallbacks if introspection fails)
# ----------------------------------------------------------------------------
def _tpu_params():
    vmem_cap = 64 << 20          # conservative (v7x-sized) default
    multi_core = False
    try:
        info = pltpu.get_tpu_info()
        vmem_cap = int(getattr(info, "vmem_capacity_bytes", vmem_cap))
    except Exception:
        pass
    try:
        kind = jax.devices()[0].device_kind.lower()
        # v4 / v5p megacore and v7x (2 TensorCores) benefit from an even, >=2 grid
        multi_core = any(t in kind for t in ("v4", "v5p", "7"))
    except Exception:
        pass
    return vmem_cap, multi_core


def single_block_basis_sampler(basis_spqb_masked: jax.Array,
                               sizes_masked: jax.Array,
                               *,
                               out_dtype=None) -> jax.Array:
    """basis_spqb_masked: (S, p, q, Bm) mask-selected sampled basis, already in
    the module's output axis order (permute hoisted out of the kernel).
    sizes_masked: (Bm,) per-basis-element scale (kept f32 for the multiply).
    Returns (S, p, q, Bm) = basis * sizes  (the module's forward output)."""
    S, p, q, Bm = basis_spqb_masked.shape
    in_dtype = jnp.dtype(basis_spqb_masked.dtype)
    out_dtype = in_dtype if out_dtype is None else jnp.dtype(out_dtype)

    F = p * q * Bm

    # Flatten trailing dims (contiguous -> free). F stays UNpadded: the
    # BlockSpec last dim equals the full array extent, so the only cost is a
    # masked tail vst on the final partial vreg.
    basis_flat = basis_spqb_masked.reshape(S, F)
    # sizes broadcast over (p, q): one length-F f32 row vector.
    sizes_flat = jnp.broadcast_to(
        jnp.asarray(sizes_masked, jnp.float32).reshape(1, 1, Bm),
        (1, p * q, Bm)).reshape(1, F)

    # ---- dtype-aware sublane rounding: 8 rows f32, 16 bf16, 32 int8/fp8.
    it_in, it_out = in_dtype.itemsize, out_dtype.itemsize
    sublane = 8 * (4 // min(it_in, it_out, 4))

    # ---- chip-aware tile selection: MiB-scale blocks amortize the ~0.35us
    #      per-grid-step overhead; slightly smaller target on 64 MiB-VMEM parts.
    vmem_cap, multi_core = _tpu_params()
    target_block_bytes = (8 << 20) if vmem_cap >= (100 << 20) else (6 << 20)

    row_bytes_in = F * it_in
    tile_s = max(sublane, (target_block_bytes // max(row_bytes_in, 1)) // sublane * sublane)
    tile_s = min(tile_s, _round_up(S, sublane))
    grid_n = pl.cdiv(S, tile_s)
    if multi_core:
        # shard the S axis across the 2 TensorCores: >=2 and even grid steps.
        if grid_n < 2:
            grid_n = 2
        if grid_n % 2:
            grid_n += 1
        tile_s = max(sublane, _round_up(pl.cdiv(S, grid_n), sublane))
        grid_n = pl.cdiv(S, tile_s)
    # (Last block may be ragged; Pallas masks the out-of-bounds write-back.)

    # ---- VMEM budget: 2x double-buffered input + 2x output + sizes row + headroom.
    in_block = tile_s * F * it_in
    out_block = tile_s * F * it_out
    vmem_need = 2 * (in_block + out_block) + 2 * F * 4 + (2 << 20)
    vmem_limit = int(max(vmem_need, 16 << 20))

    out_flat = pl.pallas_call(
        _scale_kernel,
        out_shape=jax.ShapeDtypeStruct((S, F), out_dtype),
        grid_spec=pltpu.PrefetchScalarGridSpec(
            num_scalar_prefetch=0,
            grid=(grid_n,),
            in_specs=[
                pl.BlockSpec((tile_s, F), lambda i: (i, 0)),
                pl.BlockSpec((1, F), lambda i: (0, 0)),
            ],
            out_specs=pl.BlockSpec((tile_s, F), lambda i: (i, 0)),
        ),
        compiler_params=pltpu.CompilerParams(
            dimension_semantics=("parallel",),
            vmem_limit_bytes=vmem_limit,
        ),
    )(basis_flat, sizes_flat)

    # Nothing was padded -> contiguous relabel, no extra HBM pass.
    return out_flat.reshape(S, p, q, Bm)


# ----------------------------------------------------------------------------
# Glue: deterministic synthetic stand-in for basis.sample, emitted directly in
# the module's OUTPUT axis order (S, p, q, B) so no transpose is ever needed.
# ----------------------------------------------------------------------------
def synthetic_basis_sample_spqb(points: jax.Array, B: int, p: int, q: int) -> jax.Array:
    """Deterministic (S, p, q, B) float32 'sampled analytical basis'."""
    x, y = points[:, 0], points[:, 1]
    r2 = x * x + y * y                                     # (S,)
    theta = jnp.arctan2(y, x)                              # (S,)
    freqs = jnp.arange(1, B + 1, dtype=jnp.float32)        # (B,)
    ang = jnp.cos(freqs[None, :] * theta[:, None]) * jnp.exp(-r2[:, None])  # (S, B)
    po = jnp.arange(p, dtype=jnp.float32)
    qo = jnp.arange(q, dtype=jnp.float32)
    grid = jnp.cos(po[:, None] + 2.0 * qo[None, :]) + 0.5  # (p, q)
    return grid[None, :, :, None] * ang[:, None, None, :]  # (S, p, q, B)


if __name__ == "__main__":
    # Small shapes consistent with the module's forward:
    #   points: (S, d)  -> S sample points in d=2 dims
    #   basis has B elements, each a (p x q) matrix block; mask keeps Bm of them.
    S, d = 96, 2
    B, p, q = 12, 4, 4

    key = jax.random.PRNGKey(0)
    points = jax.random.normal(key, (S, d), dtype=jnp.float32)

    # Deterministic module "parameters": mask and per-basis-element sizes.
    mask = np.ones(B, dtype=bool)
    mask[[2, 5, 11]] = False                               # keep Bm = 9 elements
    keep_idx = np.where(mask)[0]
    Bm = int(mask.sum())
    sizes_full = np.asarray([(i % 3) + 1 for i in range(B)], dtype=np.float32)
    sizes_masked = jnp.asarray(sizes_full[mask])           # (Bm,)

    # basis.sample(points) emitted in (S, p, q, B) order + static mask select:
    # this realizes permute((0,2,3,1))[..., mask] as layout plumbing (glue).
    basis_spqb = synthetic_basis_sample_spqb(points, B, p, q)   # (S, p, q, B)
    basis_spqb_masked = basis_spqb[..., keep_idx]               # (S, p, q, Bm)

    out = single_block_basis_sampler(basis_spqb_masked, sizes_masked)
    out = jax.block_until_ready(out)

    # Pure-JAX reference of the PyTorch forward:
    #   sample -> (S,B,p,q); permute((0,2,3,1)); [..., mask]; * sizes(1,1,1,Bm)
    basis_sbpq = jnp.transpose(basis_spqb, (0, 3, 1, 2))        # (S, B, p, q)
    ref = (jnp.transpose(basis_sbpq, (0, 2, 3, 1))[..., keep_idx]
           * sizes_masked.reshape(1, 1, 1, Bm))
    assert out.shape == (S, p, q, Bm)
    np.testing.assert_allclose(np.asarray(out), np.asarray(ref), rtol=1e-6, atol=1e-6)

    print("KERNEL_OK")
</pallas_src>

<mosaic_0001>
module attributes {stable_mosaic.version = 11 : i64} {
  func.func @_scale_kernel(%arg0: i32, %arg1: memref<96x144xf32, #tpu.memory_space<vmem>>, %arg2: memref<1x144xf32, #tpu.memory_space<vmem>>, %arg3: memref<96x144xf32, #tpu.memory_space<vmem>>) attributes {dimension_semantics = [#tpu.dimension_semantics<parallel>], iteration_bounds = array<i64: 1>, scalar_prefetch = 0 : i64, scratch_operands = 0 : i64, tpu.core_type = #tpu.core_type<tc>, window_params = [{transform_indices = @transform_0, window_bounds = array<i64: 96, 144>}, {pipeline_mode = #tpu.pipeline_mode<synchronous>, transform_indices = @transform_1, window_bounds = array<i64: 1, 144>}, {transform_indices = @transform_2, window_bounds = array<i64: 96, 144>}]} {
    %c0 = arith.constant 0 : index
    %c0_0 = arith.constant 0 : index
    %0 = vector.load %arg1[%c0, %c0_0] : memref<96x144xf32, #tpu.memory_space<vmem>>, vector<96x144xf32>
    %c0_1 = arith.constant 0 : index
    %c0_2 = arith.constant 0 : index
    %1 = vector.load %arg2[%c0_1, %c0_2] : memref<1x144xf32, #tpu.memory_space<vmem>>, vector<1x144xf32>
    %2 = vector.broadcast %1 : vector<1x144xf32> to vector<96x144xf32>
    %3 = arith.mulf %0, %2 : vector<96x144xf32>
    %c0_3 = arith.constant 0 : index
    %c0_4 = arith.constant 0 : index
    %4 = vector.load %arg3[%c0_3, %c0_4] : memref<96x144xf32, #tpu.memory_space<vmem>>, vector<96x144xf32>
    tpu.vector_store %arg3[%c0_3, %c0_4], %3 {strides = array<i32>} : memref<96x144xf32, #tpu.memory_space<vmem>>, vector<96x144xf32>,
    return
  }
  func.func @transform_0(%arg0: i32) -> (i32, i32) {
    %c0_i32 = arith.constant 0 : i32
    %c0_i32_0 = arith.constant 0 : i32
    return %arg0, %c0_i32 : i32, i32
  }
  func.func @transform_1(%arg0: i32) -> (i32, i32) {
    %c0_i32 = arith.constant 0 : i32
    %c0_i32_0 = arith.constant 0 : i32
    %c0_i32_1 = arith.constant 0 : i32
    return %c0_i32, %c0_i32_0 : i32, i32
  }
  func.func @transform_2(%arg0: i32) -> (i32, i32) {
    %c0_i32 = arith.constant 0 : i32
    %c0_i32_0 = arith.constant 0 : i32
    return %arg0, %c0_i32 : i32, i32
  }
}

</mosaic_0001>

<bundles_post_ra>
// kernel: tpu_custom_call.1
= control target key start
LH: loop header
LB: loop body
LE: loop exit
PB: predicated region body
PF: predicated region fallthrough
CT: control target
= control target key end

     0   :  { %v37_v0 = vlaneseq  ;;  %vm72_vm0 = vcmask 130048   ;;  %s274_s0 = inlined_call_operand.vmem [shape: f32[96,144], index: 0, kind: input, shape index: {}]   ;;  %s275_s1 = inlined_call_operand.vmem [shape: f32[1,144], index: 1, kind: input, shape index: {}]   ;;  %s276_s2 = inlined_call_operand.vmem [shape: f32[96,144], index: 2, kind: output, shape index: {}]  }
   0x1   :  { %v11_v2 = vld [vmem:[%s274_s0] sm:$0xff]  ;;  %v12_v4 = vld [vmem:[%s274_s0 + $0x8] sm:$0xff]  ;;  %v13_v5 = vld [vmem:[%s274_s0 + $0x10] sm:$0xff] }
   0x2   :  { %v38_v1 = vshrl.u32 %v37_v0, 7  ;;  %v35_v3 = vld [vmem:[%s275_s1] sm:$0x3]  ;;  %v14_v8 = vld [vmem:[%s274_s0 + $0x18] sm:$0xff]  ;;  %v16_v10 = vld [vmem:[%s274_s0 + $0x28] sm:$0xff] }
   0x3   :  { %v15_v9 = vld [vmem:[%s274_s0 + $0x20] sm:$0xff]  ;;  %v17_v11 = vld [vmem:[%s274_s0 + $0x30] sm:$0xff]  ;;  %v18_v12 = vld [vmem:[%s274_s0 + $0x38] sm:$0xff] }
   0x4   :  { %v39_v6 = vsub.s32 0, %v38_v1  ;;  %v43_v7 = vsub.s32 1, %v38_v1  ;;  %v19_v13 = vld [vmem:[%s274_s0 + $0x40] sm:$0xff]  ;;  %v20_v16 = vld [vmem:[%s274_s0 + $0x48] sm:$0xff]  ;;  %v21_v17 = vld [vmem:[%s274_s0 + $0x50] sm:$0xff] }
   0x5   :  { %v22_v18 = vld [vmem:[%s274_s0 + $0x58] sm:$0xff]  ;;  %v23_v19 = vld [vmem:[%s274_s0 + $0x60] sm:$0xff]  ;;  %v24_v20 = vld [vmem:[%s274_s0 + $0x68] sm:$0xff] }
   0x6   :  { %v40_v14 = vrot.slane %v35_v3, %v39_v6  ;;  %v44_v15 = vrot.slane %v35_v3, %v43_v7  ;;  %v25_v21 = vld [vmem:[%s274_s0 + $0x70] sm:$0xff]  ;;  %v26_v26 = vld [vmem:[%s274_s0 + $0x78] sm:$0xff]  ;;  %v27_v27 = vld [vmem:[%s274_s0 + $0x80] sm:$0xff] }
   0x7   :  { %v28_v28 = vld [vmem:[%s274_s0 + $0x88] sm:$0xff]  ;;  %v29_v33 = vld [vmem:[%s274_s0 + $0x90] sm:$0xff]  ;;  %v30_v34 = vld [vmem:[%s274_s0 + $0x98] sm:$0xff] }
   0x8   :  { %v47_v22 = vmul.f32 %v40_v14, %v11_v2  ;;  %v48_v23 = vmul.f32 %v44_v15, %v12_v4  ;;  %v49_v24 = vmul.f32 %v40_v14, %v13_v5  ;;  %v50_v25 = vmul.f32 %v44_v15, %v14_v8  ;;  %v31_v35 = vld [vmem:[%s274_s0 + $0xa0] sm:$0xff]  ;;  %v32_v40 = vld [vmem:[%s274_s0 + $0xa8] sm:$0xff]  ;;  %v33_v41 = vld [vmem:[%s274_s0 + $0xb0] sm:$0xff] }
   0x9   :  { %v51_v29 = vmul.f32 %v40_v14, %v15_v9  ;;  %v52_v30 = vmul.f32 %v44_v15, %v16_v10  ;;  %v53_v31 = vmul.f32 %v40_v14, %v17_v11  ;;  %v54_v32 = vmul.f32 %v44_v15, %v18_v12  ;;  %v34_v42 = vld [vmem:[%s274_s0 + $0xb8] sm:$0xff] }
   0xa   :  { %71 = vst [vmem:[%s276_s2] sm:$0xff] %v47_v22  ;;  %73 = vst.msk [vmem:[%s276_s2 + $0x8] sm:$0xff] %vm72_vm0, %v48_v23  ;;  %v55_v36 = vmul.f32 %v40_v14, %v19_v13  ;;  %v56_v37 = vmul.f32 %v44_v15, %v20_v16  ;;  %v57_v38 = vmul.f32 %v40_v14, %v21_v17 }
   0xb   :  { %74 = vst [vmem:[%s276_s2 + $0x10] sm:$0xff] %v49_v24  ;;  %75 = vst.msk [vmem:[%s276_s2 + $0x18] sm:$0xff] %vm72_vm0, %v50_v25  ;;  %v58_v39 = vmul.f32 %v44_v15, %v22_v18  ;;  %v59_v43 = vmul.f32 %v40_v14, %v23_v19  ;;  %v60_v44 = vmul.f32 %v44_v15, %v24_v20 }
   0xc   :  { %76 = vst [vmem:[%s276_s2 + $0x20] sm:$0xff] %v51_v29  ;;  %77 = vst.msk [vmem:[%s276_s2 + $0x28] sm:$0xff] %vm72_vm0, %v52_v30  ;;  %v61_v45 = vmul.f32 %v40_v14, %v25_v21  ;;  %v62_v46 = vmul.f32 %v44_v15, %v26_v26  ;;  %v63_v47 = vmul.f32 %v40_v14, %v27_v27 }
   0xd   :  { %78 = vst [vmem:[%s276_s2 + $0x30] sm:$0xff] %v53_v31  ;;  %79 = vst.msk [vmem:[%s276_s2 + $0x38] sm:$0xff] %vm72_vm0, %v54_v32  ;;  %v64_v48 = vmul.f32 %v44_v15, %v28_v28  ;;  %v65_v49 = vmul.f32 %v40_v14, %v29_v33  ;;  %v66_v50 = vmul.f32 %v44_v15, %v30_v34 }
   0xe   :  { %80 = vst [vmem:[%s276_s2 + $0x40] sm:$0xff] %v55_v36  ;;  %81 = vst.msk [vmem:[%s276_s2 + $0x48] sm:$0xff] %vm72_vm0, %v56_v37  ;;  %v67_v51 = vmul.f32 %v40_v14, %v31_v35  ;;  %v68_v52 = vmul.f32 %v44_v15, %v32_v40  ;;  %v69_v53 = vmul.f32 %v40_v14, %v33_v41 }
   0xf   :  { %82 = vst [vmem:[%s276_s2 + $0x50] sm:$0xff] %v57_v38  ;;  %83 = vst.msk [vmem:[%s276_s2 + $0x58] sm:$0xff] %vm72_vm0, %v58_v39  ;;  %v70_v54 = vmul.f32 %v44_v15, %v34_v42 }
  0x10   :  { %84 = vst [vmem:[%s276_s2 + $0x60] sm:$0xff] %v59_v43  ;;  %85 = vst.msk [vmem:[%s276_s2 + $0x68] sm:$0xff] %vm72_vm0, %v60_v44 }
  0x11   :  { %86 = vst [vmem:[%s276_s2 + $0x70] sm:$0xff] %v61_v45  ;;  %87 = vst.msk [vmem:[%s276_s2 + $0x78] sm:$0xff] %vm72_vm0, %v62_v46 }
  0x12   :  { %88 = vst [vmem:[%s276_s2 + $0x80] sm:$0xff] %v63_v47  ;;  %89 = vst.msk [vmem:[%s276_s2 + $0x88] sm:$0xff] %vm72_vm0, %v64_v48 }
  0x13   :  { %90 = vst [vmem:[%s276_s2 + $0x90] sm:$0xff] %v65_v49  ;;  %91 = vst.msk [vmem:[%s276_s2 + $0x98] sm:$0xff] %vm72_vm0, %v66_v50 }
  0x14   :  { %92 = vst [vmem:[%s276_s2 + $0xa0] sm:$0xff] %v67_v51  ;;  %93 = vst.msk [vmem:[%s276_s2 + $0xa8] sm:$0xff] %vm72_vm0, %v68_v52 }
  0x15   :  { %94 = vst [vmem:[%s276_s2 + $0xb0] sm:$0xff] %v69_v53  ;;  %95 = vst.msk [vmem:[%s276_s2 + $0xb8] sm:$0xff] %vm72_vm0, %v70_v54 }

</bundles_post_ra>
